<compile_context>
chip_gen: v5e
topology: v5e:2x2
jax: 0.10.0
libtpu: 0.0.40
codegen_flags: <defaults>
</compile_context>

<pallas_src>
import functools

import jax
import jax.numpy as jnp
from jax import lax
from jax.experimental import pallas as pl
from jax.experimental.pallas import tpu as pltpu

_BLOCK_BUDGET_BYTES = 8 * 1024 * 1024
_VMEM_LIMIT_BYTES = 48 * 1024 * 1024


def _pick_t_tile(T: int, F: int, itemsize: int,
                 budget_bytes: int = _BLOCK_BUDGET_BYTES) -> int:
    """Lane-dense T tile for (1, F, Tt) blocks, block bytes <= budget.

    Preference order:
      * largest multiple of 128 that divides T and fits the budget,
      * full T if T is not 128-aligned but small enough,
      * otherwise 128-aligned tiles with a masked last tile (caller uses cdiv grid).
    """
    per_col = max(F * itemsize, 1)
    max_cols = max(budget_bytes // per_col, 128)
    if T % 128 == 0:
        for m in range(T // 128, 0, -1):
            tt = m * 128
            if T % tt == 0 and tt <= max_cols:
                return tt
        # F so large that even 128 columns blow the budget: still return 128.
        # TODO(synk): add an F-tiling grid axis for extremely large f_dim.
        return 128
    if T * per_col <= budget_bytes:
        return T  # small / non-aligned length: one full-length block, no masking
    return max((max_cols // 128) * 128, 128)  # masked last tile (cdiv grid)


def _bn_stats_kernel(x_ref, sum_ref, sumsq_ref, *, t_total, t_tile):
    """Accumulate per-channel sum / sum-of-squares into this shard's output block."""
    b = pl.program_id(1)
    t = pl.program_id(2)

    @pl.when(jnp.logical_and(b == 0, t == 0))
    def _():
        sum_ref[...] = jnp.zeros_like(sum_ref)
        sumsq_ref[...] = jnp.zeros_like(sumsq_ref)

    xb = x_ref[...].astype(jnp.float32)                      # (1, F, Tt)
    if t_total % t_tile != 0:
        # Last tile extends past T: zero the out-of-bounds columns before reducing.
        col = lax.broadcasted_iota(jnp.int32, xb.shape, 2)
        xb = jnp.where(t * t_tile + col < t_total, xb, 0.0)

    sum_ref[...] += jnp.sum(xb, axis=2, keepdims=True)       # (1, F, 1)
    sumsq_ref[...] += jnp.sum(xb * xb, axis=2, keepdims=True)


def _cbn_apply_kernel(x_ref, scale_ref, bias_ref, o_ref):
    """out = x * scale + bias for one (batch, T-tile) block (pure HBM stream)."""
    xb = x_ref[...].astype(jnp.float32)                      # (1, F, Tt)
    o_ref[...] = (xb * scale_ref[...] + bias_ref[...]).astype(o_ref.dtype)


def cbatch_norm1d(x, c, w_gamma, b_gamma, w_beta, b_beta, eps=1e-5):
    """Conditional BatchNorm1d forward (training-mode batch statistics).

    x: (B, f_dim, T); c: (B, c_dim) or (B, c_dim, 1)
    w_gamma/w_beta: (f_dim, c_dim)  (Conv1d kernel-size-1 weights, squeezed)
    b_gamma/b_beta: (f_dim,)
    """
    if c.ndim == 3:
        c = c[:, :, 0]
    B, F, T = x.shape
    C = c.shape[1]
    assert c.shape[0] == B
    assert w_gamma.shape == (F, C) and w_beta.shape == (F, C)

    itemsize = jnp.dtype(x.dtype).itemsize
    Tt = _pick_t_tile(T, F, itemsize)
    nT = pl.cdiv(T, Tt)
    n_shards = 2 if (B >= 2 and B % 2 == 0) else 1
    Bs = B // n_shards

    # ---- Pass 1: per-channel partial sums (per-shard accumulators). ----
    psum, psq = pl.pallas_call(
        functools.partial(_bn_stats_kernel, t_total=T, t_tile=Tt),
        out_shape=(jax.ShapeDtypeStruct((n_shards, F, 1), jnp.float32),
                   jax.ShapeDtypeStruct((n_shards, F, 1), jnp.float32)),
        grid_spec=pltpu.PrefetchScalarGridSpec(
            num_scalar_prefetch=0,
            grid=(n_shards, Bs, nT),
            in_specs=[pl.BlockSpec((1, F, Tt),
                                   lambda s, b, t: (s * Bs + b, 0, t))],
            out_specs=(pl.BlockSpec((1, F, 1), lambda s, b, t: (s, 0, 0)),
                       pl.BlockSpec((1, F, 1), lambda s, b, t: (s, 0, 0)))),
        compiler_params=pltpu.CompilerParams(
            dimension_semantics=("parallel", "arbitrary", "arbitrary"),
            vmem_limit_bytes=_VMEM_LIMIT_BYTES),
        cost_estimate=pl.CostEstimate(
            flops=3 * B * F * T,
            transcendentals=0,
            bytes_accessed=B * F * T * itemsize + 2 * n_shards * F * 4),
    )(x)

    # ---- Wrapper-side finalize + fold of gamma/beta/mean/rstd into scale/bias. ----
    inv_count = 1.0 / float(B * T)
    total_sum = jnp.sum(psum[:, :, 0], axis=0)                        # (F,)
    total_sq = jnp.sum(psq[:, :, 0], axis=0)                          # (F,)
    mean = total_sum * inv_count
    var = jnp.maximum(total_sq * inv_count - mean * mean, 0.0)        # biased var
    rstd = lax.rsqrt(var + float(eps))

    cf = c.astype(jnp.float32)
    gamma = cf @ w_gamma.astype(jnp.float32).T + b_gamma.astype(jnp.float32)  # (B, F)
    beta = cf @ w_beta.astype(jnp.float32).T + b_beta.astype(jnp.float32)     # (B, F)
    scale2d = gamma * rstd[None, :]                                   # (B, F)
    bias2d = beta - mean[None, :] * scale2d                           # (B, F)
    scale = scale2d[:, :, None]                                       # (B, F, 1)
    bias = bias2d[:, :, None]                                         # (B, F, 1)

    # ---- Pass 2: out = x * scale + bias, fully parallel streaming grid. ----
    out = pl.pallas_call(
        _cbn_apply_kernel,
        out_shape=jax.ShapeDtypeStruct((B, F, T), x.dtype),
        grid_spec=pltpu.PrefetchScalarGridSpec(
            num_scalar_prefetch=0,
            grid=(B, nT),
            in_specs=[pl.BlockSpec((1, F, Tt), lambda b, t: (b, 0, t)),
                      pl.BlockSpec((1, F, 1), lambda b, t: (b, 0, 0)),
                      pl.BlockSpec((1, F, 1), lambda b, t: (b, 0, 0))],
            out_specs=pl.BlockSpec((1, F, Tt), lambda b, t: (b, 0, t))),
        compiler_params=pltpu.CompilerParams(
            dimension_semantics=("parallel", "parallel"),
            vmem_limit_bytes=_VMEM_LIMIT_BYTES),
        cost_estimate=pl.CostEstimate(
            flops=2 * B * F * T,
            transcendentals=0,
            bytes_accessed=2 * B * F * T * itemsize + 2 * B * F * 4),
    )(x, scale, bias)

    return out


if __name__ == "__main__":
    key = jax.random.PRNGKey(0)
    kx, kc, kwg, kwb = jax.random.split(key, 4)

    B, C_DIM, F_DIM, T = 2, 8, 4, 16
    x = jax.random.normal(kx, (B, F_DIM, T), dtype=jnp.float32)
    c = jax.random.normal(kc, (B, C_DIM), dtype=jnp.float32)
    # Non-trivial conv weights so the conditional gamma/beta path is exercised;
    # biases match PyTorch reset_parameters (gamma bias = 1, beta bias = 0).
    w_gamma = 0.1 * jax.random.normal(kwg, (F_DIM, C_DIM), dtype=jnp.float32)
    b_gamma = jnp.ones((F_DIM,), dtype=jnp.float32)
    w_beta = 0.1 * jax.random.normal(kwb, (F_DIM, C_DIM), dtype=jnp.float32)
    b_beta = jnp.zeros((F_DIM,), dtype=jnp.float32)

    out = cbatch_norm1d(x, c, w_gamma, b_gamma, w_beta, b_beta)
    jax.block_until_ready(out)

    # Pure-JAX reference (training-mode BatchNorm1d, biased variance, eps=1e-5).
    gamma = c @ w_gamma.T + b_gamma
    beta = c @ w_beta.T + b_beta
    mean = jnp.mean(x, axis=(0, 2), keepdims=True)
    var = jnp.mean((x - mean) ** 2, axis=(0, 2), keepdims=True)
    ref = gamma[:, :, None] * ((x - mean) / jnp.sqrt(var + 1e-5)) + beta[:, :, None]

    assert out.shape == x.shape and out.dtype == x.dtype
    max_err = float(jnp.max(jnp.abs(out - ref)))
    assert jnp.allclose(out, ref, atol=1e-4, rtol=1e-4), max_err
    print("KERNEL_OK")
</pallas_src>

<mosaic_0001>
module attributes {stable_mosaic.version = 11 : i64} {
  func.func @_bn_stats_kernel(%arg0: i32, %arg1: i32, %arg2: i32, %arg3: memref<1x4x16xf32, #tpu.memory_space<vmem>>, %arg4: memref<1x4x1xf32, #tpu.memory_space<vmem>>, %arg5: memref<1x4x1xf32, #tpu.memory_space<vmem>>) attributes {dimension_semantics = [#tpu.dimension_semantics<parallel>, #tpu.dimension_semantics<arbitrary>, #tpu.dimension_semantics<arbitrary>], iteration_bounds = array<i64: 2, 1, 1>, scalar_prefetch = 0 : i64, scratch_operands = 0 : i64, tpu.core_type = #tpu.core_type<tc>, window_params = [{transform_indices = @transform_0, window_bounds = array<i64: 1, 4, 16>}, {transform_indices = @transform_1, window_bounds = array<i64: 1, 4, 1>}, {transform_indices = @transform_2, window_bounds = array<i64: 1, 4, 1>}]} {
    %c0_i32 = arith.constant 0 : i32
    %0 = arith.cmpi eq, %arg1, %c0_i32 : i32
    %c0_i32_0 = arith.constant 0 : i32
    %1 = arith.cmpi eq, %arg2, %c0_i32_0 : i32
    %2 = arith.andi %0, %1 : i1
    %3 = arith.extui %2 : i1 to i32
    %c0_i32_1 = arith.constant 0 : i32
    %4 = arith.cmpi ne, %3, %c0_i32_1 : i32
    scf.if %4 {
      %cst_17 = arith.constant 0.000000e+00 : f32
      %17 = vector.broadcast %cst_17 : f32 to vector<1x4x1xf32>
      %c0_18 = arith.constant 0 : index
      %c0_19 = arith.constant 0 : index
      %c0_20 = arith.constant 0 : index
      %18 = vector.load %arg4[%c0_18, %c0_19, %c0_20] : memref<1x4x1xf32, #tpu.memory_space<vmem>>, vector<1x4x1xf32>
      tpu.vector_store %arg4[%c0_18, %c0_19, %c0_20], %17 {strides = array<i32>} : memref<1x4x1xf32, #tpu.memory_space<vmem>>, vector<1x4x1xf32>,
      %cst_21 = arith.constant 0.000000e+00 : f32
      %19 = vector.broadcast %cst_21 : f32 to vector<1x4x1xf32>
      %c0_22 = arith.constant 0 : index
      %c0_23 = arith.constant 0 : index
      %c0_24 = arith.constant 0 : index
      %20 = vector.load %arg5[%c0_22, %c0_23, %c0_24] : memref<1x4x1xf32, #tpu.memory_space<vmem>>, vector<1x4x1xf32>
      tpu.vector_store %arg5[%c0_22, %c0_23, %c0_24], %19 {strides = array<i32>} : memref<1x4x1xf32, #tpu.memory_space<vmem>>, vector<1x4x1xf32>,
    } else {
    }
    %c0 = arith.constant 0 : index
    %c0_2 = arith.constant 0 : index
    %c0_3 = arith.constant 0 : index
    %5 = vector.load %arg3[%c0, %c0_2, %c0_3] : memref<1x4x16xf32, #tpu.memory_space<vmem>>, vector<1x4x16xf32>
    %c0_4 = arith.constant 0 : index
    %c0_5 = arith.constant 0 : index
    %c0_6 = arith.constant 0 : index
    %6 = vector.load %arg4[%c0_4, %c0_5, %c0_6] : memref<1x4x1xf32, #tpu.memory_space<vmem>>, vector<1x4x1xf32>
    %cst = arith.constant dense<0.000000e+00> : vector<1x4xf32>
    %7 = vector.multi_reduction <add>, %5, %cst [2] : vector<1x4x16xf32> to vector<1x4xf32>
    %8 = vector.shape_cast %7 : vector<1x4xf32> to vector<1x4x1xf32>
    %9 = arith.addf %6, %8 : vector<1x4x1xf32>
    %c0_7 = arith.constant 0 : index
    %c0_8 = arith.constant 0 : index
    %c0_9 = arith.constant 0 : index
    %10 = vector.load %arg4[%c0_7, %c0_8, %c0_9] : memref<1x4x1xf32, #tpu.memory_space<vmem>>, vector<1x4x1xf32>
    tpu.vector_store %arg4[%c0_7, %c0_8, %c0_9], %9 {strides = array<i32>} : memref<1x4x1xf32, #tpu.memory_space<vmem>>, vector<1x4x1xf32>,
    %c0_10 = arith.constant 0 : index
    %c0_11 = arith.constant 0 : index
    %c0_12 = arith.constant 0 : index
    %11 = vector.load %arg5[%c0_10, %c0_11, %c0_12] : memref<1x4x1xf32, #tpu.memory_space<vmem>>, vector<1x4x1xf32>
    %12 = arith.mulf %5, %5 : vector<1x4x16xf32>
    %cst_13 = arith.constant dense<0.000000e+00> : vector<1x4xf32>
    %13 = vector.multi_reduction <add>, %12, %cst_13 [2] : vector<1x4x16xf32> to vector<1x4xf32>
    %14 = vector.shape_cast %13 : vector<1x4xf32> to vector<1x4x1xf32>
    %15 = arith.addf %11, %14 : vector<1x4x1xf32>
    %c0_14 = arith.constant 0 : index
    %c0_15 = arith.constant 0 : index
    %c0_16 = arith.constant 0 : index
    %16 = vector.load %arg5[%c0_14, %c0_15, %c0_16] : memref<1x4x1xf32, #tpu.memory_space<vmem>>, vector<1x4x1xf32>
    tpu.vector_store %arg5[%c0_14, %c0_15, %c0_16], %15 {strides = array<i32>} : memref<1x4x1xf32, #tpu.memory_space<vmem>>, vector<1x4x1xf32>,
    return
  }
  func.func @transform_0(%arg0: i32, %arg1: i32, %arg2: i32) -> (i32, i32, i32) {
    %c1_i32 = arith.constant 1 : i32
    %0 = arith.muli %arg0, %c1_i32 : i32
    %1 = arith.addi %0, %arg1 : i32
    %c0_i32 = arith.constant 0 : i32
    %c0_i32_0 = arith.constant 0 : i32
    return %1, %c0_i32, %arg2 : i32, i32, i32
  }
  func.func @transform_1(%arg0: i32, %arg1: i32, %arg2: i32) -> (i32, i32, i32) {
    %c0_i32 = arith.constant 0 : i32
    %c0_i32_0 = arith.constant 0 : i32
    %c0_i32_1 = arith.constant 0 : i32
    return %arg0, %c0_i32, %c0_i32_0 : i32, i32, i32
  }
  func.func @transform_2(%arg0: i32, %arg1: i32, %arg2: i32) -> (i32, i32, i32) {
    %c0_i32 = arith.constant 0 : i32
    %c0_i32_0 = arith.constant 0 : i32
    %c0_i32_1 = arith.constant 0 : i32
    return %arg0, %c0_i32, %c0_i32_0 : i32, i32, i32
  }
}

</mosaic_0001>

<bundles_post_ra>
// kernel: tpu_custom_call.1
= control target key start
LH: loop header
LB: loop body
LE: loop exit
PB: predicated region body
PF: predicated region fallthrough
CT: control target
= control target key end

     0   :  { %8 = vsyncpa [#allocation3], 0  ;;  %s593_s0 = inlined_call_operand.hbm [shape: f32[2,4,16], index: 0, kind: input, shape index: {}]   ;;  %s594_s1 = inlined_call_operand.vmem [shape: f32[2,4,1], index: 1, kind: output, shape index: {0}]   ;;  %s595_s2 = inlined_call_operand.vmem [shape: f32[2,4,1], index: 2, kind: output, shape index: {1}]  }
   0x1   :  { %10 = vsyncpa [#allocation3 + $0x1], 0  ;;  %s498_s9 = smov 0   ;;  %s500_s10 = smov 0  }
   0x2   :  { %s502_s11 = smov 0   ;;  %s504_s12 = smov 0  }
   0x3   :  { %s506_s13 = smov 0   ;;  %s508_s14 = smov 0  }
   0x4 LB: > { %s332_s15 = sadd.s32 4294967295, %s480_s14   ;;  %s35_s16 = sadd.s32 1, %s476_s13  ;;  %s480_s14 = sphi %s508_s14, %s16_s14   ;;  %s476_s13 = sphi %s506_s13, %s602_s13   ;;  %s472_s12 = sphi %s504_s12, %s601_s12   ;;  %s468_s11 = sphi %s502_s11, %s600_s11   ;;  %s464_s10 = sphi %s500_s10, %s599_s10   ;;  %s460_s9 = sphi %s498_s9, %s598_s9  }
   0x5   : > { %p37_p0 = scmp.ge.s32.totalorder %s35_s16, 2  ;;  %s46_s17 = sadd.s32 1, %s468_s11 }
   0x6   : > { %p53_p1 = scmp.ne.s32.totalorder %s468_s11, %s464_s10  ;;  %p54_p2 = scmp.eq.s32.totalorder %s480_s14, 0 }
   0x7   : > { %s604_s16 = smov (%p37_p0, %s35_s16), 0  ;;  %p59_p4 = scmp.ne.s32.totalorder %s464_s10, %s460_s9 }
   0x8   : > { %p534_p3 = por %p54_p2, %p53_p1  ;;  %s41_s19 = ssub.s32 %s476_s13, %s604_s16 }
   0x9   : > { %p60_p5 = scmp.eq.s32.totalorder %s332_s15, 0  ;;  %p44_p6 = scmp.eq.s32.totalorder %s41_s19, 0 }
   0xa   : > { %p350_p8 = scmp.lt.s32.totalorder %s480_s14, 2  ;;  %s135_s22 = sand.u32 1, %s468_s11  }
   0xb   : > { %p541_p7 = por %p60_p5, %p59_p4  ;;  %s337_s23 = sshll.u32 %s476_s13, 2 }
   0xc   : > { %s547_s21 = scalar_select %p44_p6, %s468_s11, %s46_s17  }
   0xd   : > { %s336_s24 = sshll.u32 %s135_s22, 2  ;;  %s145_s27 = scalar_lea.hbm %s593_s0, %s337_s23 }
   0xe   : > { %s147_s28 = sshll.u32 %s145_s27, 4  ;;  %s139_s29 = scalar_lea.vmem [#allocation2], %s336_s24  ;;  %s148_s28 = int_to_ptr.hbm [resolvable:$true] %s147_s28 }
   0xf   : > { %s149_s30 = sshll.u32 %s139_s29, 4  ;;  %p347_p9 = pnand %p350_p8, %p534_p3  ;;  %s150_s30 = int_to_ptr.vmem [resolvable:$true] %s149_s30 }
  0x10   : > { %p338_p10 = scmp.ge.s32.totalorder %s480_s14, 1  ;;  %p154_p11 = scmp.lt.s32.totalorder %s480_s14, 3 }
  0x11   : > { %s136_s3 = scalar_lea.sflag [#allocation3], %s135_s22 }
  0x12   : > { %349 = dma.hbm_to_vmem [thread:$0]  (!%p347_p9), %s148_s28, 64, %s150_s30, %s136_s3  }
  0x13   : > { %p155_p12 = pnand %p338_p10, %p154_p11 }
  0x14   : > { %s160_s4 = sand.u32 (!%p155_p12), 1, %s464_s10  }
  0x15   : > { %158 = sbr.rel (%p155_p12) target bundleno = 157 (0x9d), region = 24  ;;  %s339_s5 = sshll.u32 (!%p155_p12), %s160_s4, 2 }
  0x16   : > { %s161_s6 = scalar_lea.sflag (!%p155_p12), [#allocation3], %s160_s4  ;;  %s164_s7 = scalar_lea.vmem (!%p155_p12), [#allocation2], %s339_s5 }
  0x1a   : > { %455 = dma.done.wait (%p541_p7), %s161_s6, 64  }
  0x1b   : > { %457 = vsyncadd (%p541_p7), %s161_s6, 4294967232  ;;  %p190_p13 = scmp.lt.s32.totalorder %s472_s12, 1  ;;  %vm204_vm0 = vcmask 3072   ;;  %vm209_vm1 = vcmask 125952   ;;  %v482_v0 = vmov 0.0  }
  0x1c   : > { %v207_v1 = vld [vmem:[%s164_s7] sm:$0xf] }
  0x1d   : > { %s606_s12 = smov (!%p190_p13, %s472_s12), 1  ;;  %v210_v2 = vsel %vm209_vm1, %v207_v1, 0.0  ;;  %v217_v3 = vmul.f32 %v207_v1, %v207_v1 }
  0x1e   : > { %s340_s8 = sshll.u32 %s606_s12, 2  ;;  %211 = vadd.xlane.f32.xlu0 %v210_v2 }
  0x1f   : > { %s193_s17 = scalar_lea.vmem %s594_s1, %s340_s8  ;;  %s197_s22 = scalar_lea.vmem %s595_s2, %s340_s8  ;;  %v218_v4 = vsel %vm209_vm1, %v217_v3, 0.0 }
  0x20   : > { %205 = vst.msk [vmem:[%s193_s17] sm:$0xf] %vm204_vm0, %v482_v0 }
  0x21   : > { %206 = vst.msk [vmem:[%s197_s22] sm:$0xf] %vm204_vm0, %v482_v0 }
  0x26   : > { %219 = vadd.xlane.f32.xlu0 %v218_v4 }
  0x27   : > { %v208_v5 = vld [vmem:[%s193_s17] sm:$0xf] }
  0x28   : > { %v216_v8 = vld [vmem:[%s197_s22] sm:$0xf] }
  0x91   : > { %v212_v6 = vpop.xlane.xlu0 %211 }
  0x92   : > { %v213_v7 = vadd.f32 %v212_v6, %v208_v5 }
  0x94   : > { %215 = vst.msk [vmem:[%s193_s17] sm:$0xf] %vm204_vm0, %v213_v7 }
  0x99   : > { %v220_v9 = vpop.xlane.xlu0 %219 }
  0x9a   : > { %v221_v10 = vadd.f32 %v220_v9, %v216_v8 }
  0x9c   : > { %222 = vst.msk [vmem:[%s197_s22] sm:$0xf] %vm204_vm0, %v221_v10 }
  0x9d PF: > { %s16_s14 = sadd.s32 1, %s480_s14   ;;  %s598_s9 = smov %s464_s10 }
  0x9e   : > { %p13_p0 = scmp.ge.s32.totalorder %s16_s14, 4   ;;  %s599_s10 = smov %s468_s11 }
  0x9f   : > { %s600_s11 = smov %s547_s21  ;;  %s601_s12 = smov %s476_s13 }
  0xa0   : > { %s602_s13 = smov %s604_s16  ;;  %15 = sbr.rel (!%p13_p0) target bundleno = 4 (0x4), region = 80 }
  0xa5   :  { %256 = vsyncpa [#allocation3], 1 }
  0xa6   :  { %258 = vsyncpa [#allocation3 + $0x1], 1 }

</bundles_post_ra>
